<compile_context>
chip_gen: v7x
topology: tpu7x:2x2x1
jax: 0.10.0
libtpu: 0.0.40
codegen_flags: <defaults>
</compile_context>

<pallas_src>
import jax
import jax.numpy as jnp
from jax import lax
from jax.experimental import pallas as pl
from jax.experimental.pallas import tpu as pltpu


# Per-buffer VMEM budget for one block; pipeline holds ~2 in + 2 out copies.
_BLOCK_BUDGET_BYTES = 2 * 1024 * 1024


def _pick_images_per_block(n, bytes_per_image):
    """Fold as many images as fit the budget into one grid step, but keep at
    least 2 grid steps when possible so both v7x TensorCores get work."""
    nb = max(1, _BLOCK_BUDGET_BYTES // max(1, bytes_per_image))
    nb = min(nb, n)
    while n % nb != 0:          # nb must divide N exactly
        nb -= 1
    if n // nb < 2 and n >= 2:  # leave >=2 parallel grid steps (megacore)
        nb = max(1, nb // 2)
        while n % nb != 0:
            nb -= 1
    return nb


def he_forward(x, dt, c, h):
    """One explicit heat-equation step. x: (N, 1, H, W). Same shape/dtype out."""
    alpha = float(dt) * float(c) / float(h) ** 2
    N, C, H, W = x.shape
    assert C == 1, "HE's conv kernel has a single input/output channel"

    # Squeeze the unit channel and fold batch into rows: (N*H, W). Every block
    # is a whole number of images, so image top/bottom edges always fall on
    # rows whose (row % H) is 0 or H-1 inside the block.
    x2 = x.reshape(N * H, W)

    nb = _pick_images_per_block(N, H * W * x.dtype.itemsize)
    tile_r = nb * H
    if tile_r % 8 != 0 and tile_r != N * H:
        # Respect the (8,128) sublane constraint; fall back to a single block.
        nb, tile_r = N, N * H
    grid = (N // nb,)

    c_self = 1.0 - 4.0 * alpha  # coefficient of the center tap
    c_nbr = alpha               # coefficient of each neighbor tap

    def he_kernel(x_ref, o_ref):
        xb = x_ref[...].astype(jnp.float32)                       # (tile_r, W)

        # Neighbor shifts on the XLU (roll); replication-pad fix-up on the VPU
        # (select the original edge value). Wrapped values from the rotation
        # only land on masked positions, so they never leak into the result.
        row = lax.broadcasted_iota(jnp.int32, (tile_r, W), 0) % H  # row within image
        col = lax.broadcasted_iota(jnp.int32, (tile_r, W), 1)

        up = jnp.where(row == 0, xb, pltpu.roll(xb, shift=1, axis=0))
        down = jnp.where(row == H - 1, xb, pltpu.roll(xb, shift=tile_r - 1, axis=0))
        left = jnp.where(col == 0, xb, pltpu.roll(xb, shift=1, axis=1))
        right = jnp.where(col == W - 1, xb, pltpu.roll(xb, shift=W - 1, axis=1))

        o_ref[...] = (c_self * xb
                      + c_nbr * (up + down + left + right)).astype(o_ref.dtype)

    block_bytes = tile_r * W * x.dtype.itemsize
    # 2 in + 2 out double buffers plus headroom; 32 MiB floor is safe on
    # v5e (128 MiB phys), v6e (128 MiB) and v7x (64 MiB).
    vmem_limit = int(max(32 << 20, 4 * block_bytes + (2 << 20)))
    # TODO(synk): for images so large that a single (nb*H, W) block exceeds
    # ~VMEM/6, tile H with a 1-row halo via manual make_async_copy instead.

    out2 = pl.pallas_call(
        he_kernel,
        out_shape=jax.ShapeDtypeStruct((N * H, W), x.dtype),
        grid=grid,
        in_specs=[pl.BlockSpec((tile_r, W), lambda i: (i, 0))],
        out_specs=pl.BlockSpec((tile_r, W), lambda i: (i, 0)),
        compiler_params=pltpu.CompilerParams(
            dimension_semantics=("parallel",),
            vmem_limit_bytes=vmem_limit,
        ),
    )(x2)
    return out2.reshape(N, C, H, W)


def he_reference(x, dt, c, h):
    """Plain-JAX reference (replication pad + explicit 5-point stencil)."""
    alpha = dt * c / h ** 2
    xp = jnp.pad(x, ((0, 0), (0, 0), (1, 1), (1, 1)), mode="edge")
    z = (
        xp[:, :, :-2, 1:-1]    # up
        + xp[:, :, 2:, 1:-1]   # down
        + xp[:, :, 1:-1, :-2]  # left
        + xp[:, :, 1:-1, 2:]   # right
        - 4.0 * x
    )
    return x + alpha * z


if __name__ == "__main__":
    # Module parameters (deterministic, in-script).
    dt, c, h = 0.1, 1.0, 1.0

    key = jax.random.PRNGKey(0)
    x = jax.random.normal(key, (2, 1, 16, 16), dtype=jnp.float32)

    out = jax.block_until_ready(he_forward(x, dt, c, h))

    ref = he_reference(x, dt, c, h)
    assert out.shape == x.shape and out.dtype == x.dtype
    assert jnp.allclose(out, ref, atol=1e-5, rtol=1e-5), "mismatch vs reference"

    print("KERNEL_OK")
</pallas_src>

<mosaic_0001>
module attributes {stable_mosaic.version = 11 : i64} {
  func.func @he_kernel(%arg0: i32, %arg1: memref<16x16xf32, #tpu.memory_space<vmem>>, %arg2: memref<16x16xf32, #tpu.memory_space<vmem>>) attributes {dimension_semantics = [#tpu.dimension_semantics<parallel>], iteration_bounds = array<i64: 2>, scalar_prefetch = 0 : i64, scratch_operands = 0 : i64, tpu.core_type = #tpu.core_type<tc>, window_params = [{transform_indices = @transform_0, window_bounds = array<i64: 16, 16>}, {transform_indices = @transform_1, window_bounds = array<i64: 16, 16>}]} {
    %c0 = arith.constant 0 : index
    %c0_0 = arith.constant 0 : index
    %0 = vector.load %arg1[%c0, %c0_0] : memref<16x16xf32, #tpu.memory_space<vmem>>, vector<16x16xf32>
    %1 = tpu.iota {dimensions = array<i32: 0>} : vector<16x16xi32>
    %c16_i32 = arith.constant 16 : i32
    %c0_i32 = arith.constant 0 : i32
    %2 = arith.cmpi eq, %c16_i32, %c0_i32 : i32
    %c1_i32 = arith.constant 1 : i32
    %3 = arith.select %2, %c1_i32, %c16_i32 : i32
    %4 = vector.broadcast %3 : i32 to vector<16x16xi32>
    %5 = arith.remsi %1, %4 : vector<16x16xi32>
    %c0_i32_1 = arith.constant 0 : i32
    %6 = vector.broadcast %c0_i32_1 : i32 to vector<16x16xi32>
    %7 = arith.cmpi ne, %5, %6 : vector<16x16xi32>
    %c0_i32_2 = arith.constant 0 : i32
    %8 = vector.broadcast %c0_i32_2 : i32 to vector<16x16xi32>
    %9 = arith.cmpi slt, %5, %8 : vector<16x16xi32>
    %c0_i32_3 = arith.constant 0 : i32
    %10 = arith.cmpi slt, %3, %c0_i32_3 : i32
    %11 = vector.broadcast %10 : i1 to vector<16x16xi1>
    %12 = vector.broadcast %11 : vector<16x16xi1> to vector<16x16xi1>
    %13 = arith.xori %9, %12 : vector<16x16xi1>
    %14 = arith.andi %13, %7 : vector<16x16xi1>
    %15 = vector.broadcast %3 : i32 to vector<16x16xi32>
    %16 = arith.addi %5, %15 : vector<16x16xi32>
    %17 = arith.select %14, %16, %5 : vector<16x16xi1>, vector<16x16xi32>
    %18 = tpu.iota {dimensions = array<i32: 1>} : vector<16x16xi32>
    %c0_i32_4 = arith.constant 0 : i32
    %19 = vector.broadcast %c0_i32_4 : i32 to vector<16x16xi32>
    %20 = arith.cmpi eq, %17, %19 : vector<16x16xi32>
    %c1_i32_5 = arith.constant 1 : i32
    %21 = tpu.dynamic_rotate %0 by %c1_i32_5 dim 0 : vector<16x16xf32>, i32 -> vector<16x16xf32>
    %22 = arith.select %20, %0, %21 : vector<16x16xi1>, vector<16x16xf32>
    %c15_i32 = arith.constant 15 : i32
    %23 = vector.broadcast %c15_i32 : i32 to vector<16x16xi32>
    %24 = arith.cmpi eq, %17, %23 : vector<16x16xi32>
    %c15_i32_6 = arith.constant 15 : i32
    %25 = tpu.dynamic_rotate %0 by %c15_i32_6 dim 0 : vector<16x16xf32>, i32 -> vector<16x16xf32>
    %26 = arith.select %24, %0, %25 : vector<16x16xi1>, vector<16x16xf32>
    %c0_i32_7 = arith.constant 0 : i32
    %27 = vector.broadcast %c0_i32_7 : i32 to vector<16x16xi32>
    %28 = arith.cmpi eq, %18, %27 : vector<16x16xi32>
    %c1_i32_8 = arith.constant 1 : i32
    %29 = tpu.dynamic_rotate %0 by %c1_i32_8 dim 1 : vector<16x16xf32>, i32 -> vector<16x16xf32>
    %30 = arith.select %28, %0, %29 : vector<16x16xi1>, vector<16x16xf32>
    %c15_i32_9 = arith.constant 15 : i32
    %31 = vector.broadcast %c15_i32_9 : i32 to vector<16x16xi32>
    %32 = arith.cmpi eq, %18, %31 : vector<16x16xi32>
    %c15_i32_10 = arith.constant 15 : i32
    %33 = tpu.dynamic_rotate %0 by %c15_i32_10 dim 1 : vector<16x16xf32>, i32 -> vector<16x16xf32>
    %34 = arith.select %32, %0, %33 : vector<16x16xi1>, vector<16x16xf32>
    %cst = arith.constant 6.000000e-01 : f32
    %35 = vector.broadcast %cst : f32 to vector<16x16xf32>
    %36 = arith.mulf %35, %0 : vector<16x16xf32>
    %37 = arith.addf %22, %26 : vector<16x16xf32>
    %38 = arith.addf %37, %30 : vector<16x16xf32>
    %39 = arith.addf %38, %34 : vector<16x16xf32>
    %cst_11 = arith.constant 1.000000e-01 : f32
    %40 = vector.broadcast %cst_11 : f32 to vector<16x16xf32>
    %41 = arith.mulf %40, %39 : vector<16x16xf32>
    %42 = arith.addf %36, %41 : vector<16x16xf32>
    %c0_12 = arith.constant 0 : index
    %c0_13 = arith.constant 0 : index
    %43 = vector.load %arg2[%c0_12, %c0_13] : memref<16x16xf32, #tpu.memory_space<vmem>>, vector<16x16xf32>
    tpu.vector_store %arg2[%c0_12, %c0_13], %42 {strides = array<i32>} : memref<16x16xf32, #tpu.memory_space<vmem>>, vector<16x16xf32>,
    return
  }
  func.func @transform_0(%arg0: i32) -> (i32, i32) {
    %c0_i32 = arith.constant 0 : i32
    %c0_i32_0 = arith.constant 0 : i32
    return %arg0, %c0_i32 : i32, i32
  }
  func.func @transform_1(%arg0: i32) -> (i32, i32) {
    %c0_i32 = arith.constant 0 : i32
    %c0_i32_0 = arith.constant 0 : i32
    return %arg0, %c0_i32 : i32, i32
  }
}

</mosaic_0001>

<bundles_post_ra>
// kernel: tpu_custom_call.1
= control target key start
LH: loop header
LB: loop body
LE: loop exit
PB: predicated region body
PF: predicated region fallthrough
CT: control target
= control target key end

     0   :  { %s316_s6 = smov 0   ;;  %s342_s0 = inlined_call_operand.vmem [shape: f32[32,16], index: 0, kind: input, shape index: {}]   ;;  %s343_s1 = inlined_call_operand.vmem [shape: f32[32,16], index: 1, kind: output, shape index: {}]  }
   0x1 LB: > { %s273_s7 = sadd.s32 4294967295, %s301_s6   ;;  %p277_p0 = scmp.ge.s32.totalorder %s301_s6, 1  ;;  %s301_s6 = sphi %s316_s6, %s11_s6  }
   0x2   : > { %p88_p1 = scmp.lt.s32.totalorder %s301_s6, 3 }
   0x4   : > { %p89_p2 = pnand %p277_p0, %p88_p1 }
   0x5   : > { %s278_s8 = sshll.u32 (!%p89_p2), %s273_s7, 1  ;;  %s303_s13 = smov (!%p89_p2), 16   ;;  %vm170_vm0 = vcmask (!%p89_p2), 1047680   ;;  %v122_v10 = vlaneseq (!%p89_p2)  ;;  %vm214_vm7 = vcmask (!%p89_p2), 130048  }
   0x6   : > { %92 = sbr.rel (%p89_p2) target bundleno = 380 (0x17c), region = 24  ;;  %p109_p3 = scmp.lt.s32.totalorder (!%p89_p2), %s278_s8, 3 }
   0x7   : > { %s304_s14 = smov (!%p89_p2), 113   ;;  %s305_s15 = smov (!%p89_p2), 127   ;;  %v123_v11 = vshrl.u32 (!%p89_p2), %v122_v10, 7  ;;  %v150_v16 = vand.u32 (!%p89_p2), 127, %v122_v10 }
   0x9   : > { %v129_v12 = vand.u32 (!%p89_p2), 15, %v123_v11  ;;  %v124_v15 = vadd.s32 (!%p89_p2), 8, %v123_v11  ;;  %vm155_vm1 = vcmp.lt.s32.totalorder (!%p89_p2), %v123_v11, 1  ;;  %vm164_vm3 = vcmp.lt.s32.totalorder (!%p89_p2), %v123_v11, 7 }
   0xa   : > { %vm169_vm4 = vcmp.eq.s32.totalorder (!%p89_p2), %v150_v16, 0  ;;  %vm193_vm6 = vcmp.eq.s32.totalorder (!%p89_p2), %v150_v16, 15 }
   0xb   : > { %vm151_vm2 = vcmp.eq.s32.totalorder (!%p89_p2), %v129_v12, 0  ;;  %v136_v20 = vand.u32 (!%p89_p2), 15, %v124_v15 }
   0xd   : > { %s345_s8 = smov (!%p109_p3, %s278_s8), 3  ;;  %vm161_vm5 = vcmp.eq.s32.totalorder %v136_v20, 15 }
   0xe   : > { %s279_s9 = sshll.u32 %s345_s8, 3 }
   0xf   : > { %s112_s12 = scalar_lea.vmem %s342_s0, %s279_s9  ;;  %s118_s18 = scalar_lea.vmem %s343_s1, %s279_s9 }
  0x10   : > { %v120_v0 = vld [vmem:[%s112_s12] sm:$0xff]  ;;  %v121_v1 = vld [vmem:[%s112_s12 + $0x8] sm:$0xff] }
  0x11   : > { %171 = vrot.lane.b32.xlu0 %v120_v0, %s303_s13  ;;  %v154_v13 = vrot.slane %v121_v1, 7  ;;  %v153_v14 = vrot.slane %v120_v0, 7  ;;  %v163_v17 = vrot.slane %v121_v1, 1  ;;  %v162_v18 = vrot.slane %v120_v0, 1 }
  0x12   : > { %v202_v35 = vmul.f32 0.6, %v120_v0  ;;  %v203_v42 = vmul.f32 0.6, %v121_v1 }
  0x13   : > { %v157_v19 = vsel %vm155_vm1, %v154_v13, %v153_v14  ;;  %v165_v22 = vsel %vm164_vm3, %v162_v18, %v163_v17  ;;  %v166_v23 = vsel %vm164_vm3, %v163_v17, %v162_v18  ;;  %v156_v27 = vsel %vm155_vm1, %v153_v14, %v154_v13 }
  0x14   : > { %v158_v21 = vsel %vm151_vm2, %v120_v0, %v157_v19  ;;  %v168_v28 = vsel %vm161_vm5, %v121_v1, %v166_v23 }
  0x15   : > { %174 = vrot.lane.b32.xlu0 %v121_v1, %s303_s13  ;;  %v204_v25 = vadd.f32 %v165_v22, %v158_v21  ;;  %v205_v31 = vadd.f32 %v168_v28, %v156_v27 }
  0x83   : > { %v172_v2 = vpop.permute.xlu0 %171 }
  0x84   : > { %v173_v3 = vsel %vm170_vm0, %v172_v2, %v120_v0 }
  0x85   : > { %177 = vrot.lane.b32.xlu1 %v173_v3, %s303_s13 }
  0x87   : > { %v175_v4 = vpop.permute.xlu0 %174 }
  0x88   : > { %v176_v5 = vsel %vm170_vm0, %v175_v4, %v121_v1 }
  0x89   : > { %179 = vrot.lane.b32.xlu1 %v176_v5, %s303_s13 }
  0xf7   : > { %v178_v6 = vpop.permute.xlu1 %177 }
  0xf8   : > { %v181_v7 = vsel %vm170_vm0, %v178_v6, %v120_v0 }
  0xf9   : > { %185 = vrot.lane.b32.xlu0 %v181_v7, %s304_s14 }
  0xfb   : > { %v180_v8 = vpop.permute.xlu1 %179 }
  0xfc   : > { %v182_v9 = vsel %vm170_vm0, %v180_v8, %v121_v1 }
  0xfd   : > { %194 = vrot.lane.b32.xlu0 %v181_v7, %s305_s15  ;;  %187 = vrot.lane.b32.xlu1 %v182_v9, %s304_s14 }
 0x101   : > { %196 = vrot.lane.b32.xlu1 %v182_v9, %s305_s15 }
 0x16b   : > { %v186_v24 = vpop.permute.xlu0 %185 }
 0x16c   : > { %v191_v26 = vsel %vm169_vm4, %v120_v0, %v186_v24 }
 0x16d   : > { %v206_v29 = vadd.f32 %v204_v25, %v191_v26 }
 0x16f   : > { %v188_v30 = vpop.permute.xlu1 %187  ;;  %v195_v32 = vpop.permute.xlu0 %194 }
 0x170   : > { %v192_v33 = vsel %vm169_vm4, %v121_v1, %v188_v30  ;;  %v200_v34 = vsel %vm193_vm6, %v120_v0, %v195_v32 }
 0x171   : > { %v208_v36 = vadd.f32 %v206_v29, %v200_v34  ;;  %v207_v37 = vadd.f32 %v205_v31, %v192_v33 }
 0x173   : > { %v210_v38 = vmul.f32 0.1, %v208_v36  ;;  %v197_v39 = vpop.permute.xlu1 %196 }
 0x174   : > { %v201_v40 = vsel %vm193_vm6, %v121_v1, %v197_v39 }
 0x175   : > { %v212_v41 = vadd.f32 %v210_v38, %v202_v35  ;;  %v209_v43 = vadd.f32 %v207_v37, %v201_v40 }
 0x177   : > { %215 = vst.msk [vmem:[%s118_s18] sm:$0xff] %vm214_vm7, %v212_v41  ;;  %v211_v44 = vmul.f32 0.1, %v209_v43 }
 0x179   : > { %v213_v45 = vadd.f32 %v211_v44, %v203_v42 }
 0x17b   : > { %216 = vst.msk [vmem:[%s118_s18 + $0x8] sm:$0xff] %vm214_vm7, %v213_v45 }
 0x17c PF: > { %s11_s6 = sadd.s32 1, %s301_s6  }
 0x17d   : > { %p8_p4 = scmp.ge.s32.totalorder %s11_s6, 4  }
 0x17f   :  { %10 = sbr.rel (!%p8_p4) target bundleno = 1 (0x1), region = 54 }

</bundles_post_ra>
